<compile_context>
chip_gen: v6e
topology: v6e:2x2x1
jax: 0.10.0
libtpu: 0.0.40
codegen_flags: <defaults>
</compile_context>

<pallas_src>
import math

import jax
import jax.numpy as jnp
from jax.experimental import pallas as pl
from jax.experimental.pallas import tpu as pltpu


def _round_up(x, m):
    return ((x + m - 1) // m) * m


def _struct_attention_kernel(attrs_ref, ent_ref, a_ref, out_ref, *,
                             alpha, attr_num):
    # attrs_ref : (TB, N, D)
    # ent_ref   : (TB, D)
    # a_ref     : (2, D)   row 0 = a_attr, row 1 = a_ent
    # out_ref   : (TB, D)
    attrs = attrs_ref[...]                                    # (TB, N, D)
    ent = ent_ref[...]                                        # (TB, D)
    a_attr = a_ref[0:1, :]                                    # (1, D)
    a_ent = a_ref[1:2, :]                                     # (1, D)

    # e[b, n] = <attrs[b, n, :], a_attr> + <ent[b, :], a_ent>
    e_attr = jnp.sum(attrs * a_attr[None, :, :], axis=-1)     # (TB, N)
    e_ent = jnp.sum(ent * a_ent, axis=-1, keepdims=True)      # (TB, 1)
    e = e_attr + e_ent                                        # (TB, N)

    # LeakyReLU with negative slope = alpha
    e = jnp.where(e > 0, e, alpha * e)

    # softmax over the attribute axis (dim=1 in torch), scaled by attr_num
    m = jnp.max(e, axis=-1, keepdims=True)                    # (TB, 1)
    p = jnp.exp(e - m)                                        # (TB, N)
    denom = jnp.sum(p, axis=-1, keepdims=True)                # (TB, 1)
    attn = (p / denom) * float(attr_num)                      # (TB, N)

    # weighted sum of attribute embeddings
    out = jnp.sum(attn[:, :, None] * attrs, axis=1)           # (TB, D)
    out_ref[...] = out.astype(out_ref.dtype)


def struct_attention_layer(attrs_emb, entity_emb, a, alpha, *, block_b=1024):
    """Pallas implementation of StructAttentionLayer.forward.

    attrs_emb : (B, N, D) float32
    entity_emb: (B, D)    float32
    a         : (2*D, 1)  float32
    returns   : (B, D)    float32
    """
    B, N, D = attrs_emb.shape
    assert entity_emb.shape == (B, D)
    assert a.shape == (2 * D, 1)
    dtype = attrs_emb.dtype

    # Fused parameter slab: row 0 = a_attr, row 1 = a_ent.
    a_mat = a[:, 0].reshape(2, D).astype(jnp.float32)

    # Batch-block the grid: TB examples per step (multiple of 8 sublanes),
    # pad B up to a multiple of TB with zero rows.
    TB = min(_round_up(block_b, 8), _round_up(B, 8))
    B_pad = _round_up(B, TB)
    if B_pad != B:
        attrs_emb = jnp.pad(attrs_emb, ((0, B_pad - B), (0, 0), (0, 0)))
        entity_emb = jnp.pad(entity_emb, ((0, B_pad - B), (0, 0)))
    grid = (B_pad // TB,)

    kernel = lambda *refs: _struct_attention_kernel(
        *refs, alpha=float(alpha), attr_num=N)

    cost = pl.CostEstimate(
        flops=4 * B_pad * N * D,
        transcendentals=B_pad * N,
        bytes_accessed=(B_pad * N * D + 2 * B_pad * D + 2 * D) * 4,
    )

    out = pl.pallas_call(
        kernel,
        out_shape=jax.ShapeDtypeStruct((B_pad, D), dtype),
        grid_spec=pltpu.PrefetchScalarGridSpec(
            num_scalar_prefetch=0,
            grid=grid,
            in_specs=[
                pl.BlockSpec((TB, N, D), lambda b: (b, 0, 0)),
                pl.BlockSpec((TB, D), lambda b: (b, 0)),
                pl.BlockSpec((2, D), lambda b: (0, 0)),
            ],
            out_specs=pl.BlockSpec((TB, D), lambda b: (b, 0)),
        ),
        compiler_params=pltpu.CompilerParams(
            dimension_semantics=("parallel",)),
        cost_estimate=cost,
    )(attrs_emb, entity_emb, a_mat)

    # TODO(synk): optional lane-dense (B//4, 128) output re-layout skipped;
    # output traffic is ~1/8 of input traffic so the masked-store cost is minor.
    return out[:B]


def struct_attention_ref(attrs_emb, entity_emb, a, alpha):
    """Pure-JAX reference mirroring the PyTorch forward exactly."""
    B, N, D = attrs_emb.shape
    ent = jnp.repeat(entity_emb[:, None, :], N, axis=1)          # (B, N, D)
    combina = jnp.concatenate([attrs_emb, ent], axis=2)          # (B, N, 2D)
    e = jnp.squeeze(jnp.matmul(combina, a), -1)                  # (B, N)
    e = jnp.where(e > 0, e, alpha * e)                           # LeakyReLU
    attention = jax.nn.softmax(e, axis=1)[:, None, :] * N        # (B, 1, N)
    out = jnp.squeeze(jnp.matmul(attention, attrs_emb), 1)       # (B, D)
    return out


if __name__ == "__main__":
    # Small shapes consistent with the module: attr_num=8, emb dim=32,
    # hidden_size = 2 * 32 = 64.
    N, D = 8, 32
    hidden_size = 2 * D
    alpha = 0.2

    key = jax.random.PRNGKey(0)
    k_attrs, k_ent, k_a = jax.random.split(key, 3)

    # xavier_uniform_ with gain=1.414 on shape (hidden_size, 1)
    bound = 1.414 * math.sqrt(6.0 / (hidden_size + 1))
    a = jax.random.uniform(k_a, (hidden_size, 1), dtype=jnp.float32,
                           minval=-bound, maxval=bound)

    # Case 1: tiny batch (B=2), single grid step.
    B = 2
    attrs_emb = jax.random.normal(k_attrs, (B, N, D), dtype=jnp.float32)
    entity_emb = jax.random.normal(k_ent, (B, D), dtype=jnp.float32)
    out = jax.block_until_ready(
        struct_attention_layer(attrs_emb, entity_emb, a, alpha))
    ref = struct_attention_ref(attrs_emb, entity_emb, a, alpha)
    assert out.shape == (B, D)
    assert jnp.allclose(out, ref, atol=1e-5, rtol=1e-5), "mismatch (B=2)"

    # Case 2: batch that exercises batch-blocking + tail padding
    # (B=37, TB=16 -> padded to 48, grid of 3 steps).
    B2 = 37
    attrs_emb2 = jax.random.normal(k_attrs, (B2, N, D), dtype=jnp.float32)
    entity_emb2 = jax.random.normal(k_ent, (B2, D), dtype=jnp.float32)
    out2 = jax.block_until_ready(
        struct_attention_layer(attrs_emb2, entity_emb2, a, alpha, block_b=16))
    ref2 = struct_attention_ref(attrs_emb2, entity_emb2, a, alpha)
    assert out2.shape == (B2, D)
    assert jnp.allclose(out2, ref2, atol=1e-5, rtol=1e-5), "mismatch (B=37)"

    print("KERNEL_OK")
</pallas_src>

<mosaic_0001>
module attributes {stable_mosaic.version = 11 : i64} {
  func.func @_lambda_(%arg0: i32, %arg1: memref<8x8x32xf32, #tpu.memory_space<vmem>>, %arg2: memref<8x32xf32, #tpu.memory_space<vmem>>, %arg3: memref<2x32xf32, #tpu.memory_space<vmem>>, %arg4: memref<8x32xf32, #tpu.memory_space<vmem>>) attributes {dimension_semantics = [#tpu.dimension_semantics<parallel>], iteration_bounds = array<i64: 1>, scalar_prefetch = 0 : i64, scratch_operands = 0 : i64, tpu.core_type = #tpu.core_type<tc>, window_params = [{transform_indices = @transform_0, window_bounds = array<i64: 8, 8, 32>}, {transform_indices = @transform_1, window_bounds = array<i64: 8, 32>}, {pipeline_mode = #tpu.pipeline_mode<synchronous>, transform_indices = @transform_2, window_bounds = array<i64: 2, 32>}, {transform_indices = @transform_3, window_bounds = array<i64: 8, 32>}]} {
    %c0 = arith.constant 0 : index
    %c0_0 = arith.constant 0 : index
    %c0_1 = arith.constant 0 : index
    %0 = vector.load %arg1[%c0, %c0_0, %c0_1] : memref<8x8x32xf32, #tpu.memory_space<vmem>>, vector<8x8x32xf32>
    %c0_2 = arith.constant 0 : index
    %c0_3 = arith.constant 0 : index
    %1 = vector.load %arg2[%c0_2, %c0_3] : memref<8x32xf32, #tpu.memory_space<vmem>>, vector<8x32xf32>
    %c0_4 = arith.constant 0 : index
    %c0_5 = arith.constant 0 : index
    %2 = vector.load %arg3[%c0_4, %c0_5] : memref<2x32xf32, #tpu.memory_space<vmem>>, vector<1x32xf32>
    %c1 = arith.constant 1 : index
    %c0_6 = arith.constant 0 : index
    %3 = vector.load %arg3[%c1, %c0_6] : memref<2x32xf32, #tpu.memory_space<vmem>>, vector<1x32xf32>
    %4 = vector.shape_cast %2 : vector<1x32xf32> to vector<1x1x32xf32>
    %5 = vector.broadcast %4 : vector<1x1x32xf32> to vector<8x8x32xf32>
    %6 = arith.mulf %0, %5 : vector<8x8x32xf32>
    %cst = arith.constant dense<0.000000e+00> : vector<8x8xf32>
    %7 = vector.multi_reduction <add>, %6, %cst [2] : vector<8x8x32xf32> to vector<8x8xf32>
    %8 = vector.broadcast %3 : vector<1x32xf32> to vector<8x32xf32>
    %9 = arith.mulf %1, %8 : vector<8x32xf32>
    %cst_7 = arith.constant dense<0.000000e+00> : vector<8xf32>
    %10 = vector.multi_reduction <add>, %9, %cst_7 [1] : vector<8x32xf32> to vector<8xf32>
    %11 = vector.shape_cast %10 : vector<8xf32> to vector<8x1xf32>
    %12 = vector.broadcast %11 : vector<8x1xf32> to vector<8x8xf32>
    %13 = arith.addf %7, %12 : vector<8x8xf32>
    %cst_8 = arith.constant 0.000000e+00 : f32
    %14 = vector.broadcast %cst_8 : f32 to vector<8x8xf32>
    %15 = arith.cmpf ogt, %13, %14 : vector<8x8xf32>
    %cst_9 = arith.constant 2.000000e-01 : f32
    %16 = vector.broadcast %cst_9 : f32 to vector<8x8xf32>
    %17 = arith.mulf %16, %13 : vector<8x8xf32>
    %18 = arith.select %15, %13, %17 : vector<8x8xi1>, vector<8x8xf32>
    %cst_10 = arith.constant dense<0xFF800000> : vector<8xf32>
    %19 = vector.multi_reduction <maximumf>, %18, %cst_10 [1] : vector<8x8xf32> to vector<8xf32>
    %20 = vector.shape_cast %19 : vector<8xf32> to vector<8x1xf32>
    %21 = vector.broadcast %20 : vector<8x1xf32> to vector<8x8xf32>
    %22 = arith.subf %18, %21 : vector<8x8xf32>
    %23 = math.exp %22 : vector<8x8xf32>
    %cst_11 = arith.constant dense<0.000000e+00> : vector<8xf32>
    %24 = vector.multi_reduction <add>, %23, %cst_11 [1] : vector<8x8xf32> to vector<8xf32>
    %25 = vector.shape_cast %24 : vector<8xf32> to vector<8x1xf32>
    %26 = vector.broadcast %25 : vector<8x1xf32> to vector<8x8xf32>
    %27 = arith.divf %23, %26 : vector<8x8xf32>
    %cst_12 = arith.constant 8.000000e+00 : f32
    %28 = vector.broadcast %cst_12 : f32 to vector<8x8xf32>
    %29 = arith.mulf %27, %28 : vector<8x8xf32>
    %30 = vector.shape_cast %29 : vector<8x8xf32> to vector<8x8x1xf32>
    %31 = vector.broadcast %30 : vector<8x8x1xf32> to vector<8x8x32xf32>
    %32 = arith.mulf %31, %0 : vector<8x8x32xf32>
    %cst_13 = arith.constant dense<0.000000e+00> : vector<8x32xf32>
    %33 = vector.multi_reduction <add>, %32, %cst_13 [1] : vector<8x8x32xf32> to vector<8x32xf32>
    %c0_14 = arith.constant 0 : index
    %c0_15 = arith.constant 0 : index
    %34 = vector.load %arg4[%c0_14, %c0_15] : memref<8x32xf32, #tpu.memory_space<vmem>>, vector<8x32xf32>
    tpu.vector_store %arg4[%c0_14, %c0_15], %33 {strides = array<i32>} : memref<8x32xf32, #tpu.memory_space<vmem>>, vector<8x32xf32>,
    return
  }
  func.func @transform_0(%arg0: i32) -> (i32, i32, i32) {
    %c0_i32 = arith.constant 0 : i32
    %c0_i32_0 = arith.constant 0 : i32
    %c0_i32_1 = arith.constant 0 : i32
    return %arg0, %c0_i32, %c0_i32_0 : i32, i32, i32
  }
  func.func @transform_1(%arg0: i32) -> (i32, i32) {
    %c0_i32 = arith.constant 0 : i32
    %c0_i32_0 = arith.constant 0 : i32
    return %arg0, %c0_i32 : i32, i32
  }
  func.func @transform_2(%arg0: i32) -> (i32, i32) {
    %c0_i32 = arith.constant 0 : i32
    %c0_i32_0 = arith.constant 0 : i32
    %c0_i32_1 = arith.constant 0 : i32
    return %c0_i32, %c0_i32_0 : i32, i32
  }
  func.func @transform_3(%arg0: i32) -> (i32, i32) {
    %c0_i32 = arith.constant 0 : i32
    %c0_i32_0 = arith.constant 0 : i32
    return %arg0, %c0_i32 : i32, i32
  }
}

</mosaic_0001>

<bundles_post_ra>
// kernel: tpu_custom_call.1
= control target key start
LH: loop header
LB: loop body
LE: loop exit
PB: predicated region body
PF: predicated region fallthrough
CT: control target
= control target key end

     0   :  { %8 = vsyncpa [#allocation3], 0  ;;  %s933_s0 = inlined_call_operand.hbm [shape: f32[8,8,32], index: 0, kind: input, shape index: {}]   ;;  %s934_s1 = inlined_call_operand.hbm [shape: f32[8,32], index: 1, kind: input, shape index: {}]   ;;  %s935_s2 = inlined_call_operand.vmem [shape: f32[2,32], index: 2, kind: input, shape index: {}]   ;;  %s936_s3 = inlined_call_operand.hbm [shape: f32[8,32], index: 3, kind: output, shape index: {}]  }
   0x1   :  { %9 = vsyncpa [#allocation6], 0 }
   0x2   :  { %10 = vsyncpa [#allocation4], 0  ;;  %s705_s12 = smov [#allocation2]  }
   0x3   :  { %s16_s13 = sshll.u32 %s705_s12, 4  ;;  %s17_s13 = int_to_ptr.vmem [resolvable:$true] %s16_s13 }
   0x4   :  { %s647_s14 = scalar_lea.vmem %s17_s13, 1024  ;;  %p652_p1 = scmp.lt.s32.totalorder %s17_s13, %s17_s13 }
   0x5   :  { %p648_p0 = scmp.ne.s32.totalorder %s17_s13, %s647_s14  ;;  %p653_p2 = scmp.lt.s32.totalorder %s647_s14, %s647_s14 }
   0x7   :  { %p654_p3 = por %p653_p2, %p652_p1 }
   0x9   :  { %p655_p4 = pnand %p654_p3, %p648_p0 }
   0xb   :  { %658 = shalt.err (!%p655_p4)
}
   0xc   :  { %s706_s15 = smov 128   ;;  %s707_s16 = smov 8  }
   0xd   :  { %22 = dma.hbm_to_vmem [thread:$0]  %s933_s0, 1024, %s17_s13, [#allocation3], %s706_s15, %s706_s15, %s707_s16  }
   0xe   :  { %s708_s19 = smov [#allocation5]  }
   0xf   :  { %s29_s20 = sshll.u32 %s708_s19, 4  ;;  %s30_s20 = int_to_ptr.vmem [resolvable:$true] %s29_s20 }
  0x10   :  { %s667_s21 = scalar_lea.vmem %s30_s20, 128  ;;  %p672_p6 = scmp.lt.s32.totalorder %s30_s20, %s30_s20 }
  0x11   :  { %p668_p5 = scmp.ne.s32.totalorder %s30_s20, %s667_s21  ;;  %p673_p7 = scmp.lt.s32.totalorder %s667_s21, %s667_s21 }
  0x13   :  { %p674_p8 = por %p673_p7, %p672_p6 }
  0x15   :  { %p675_p9 = pnand %p674_p8, %p668_p5 }
  0x17   :  { %678 = shalt.err (!%p675_p9)
}
  0x18   :  { %32 = dma.hbm_to_vmem [thread:$0]  %s934_s1, 128, %s30_s20, [#allocation6]  }
  0x19   :  { %699 = dma.done.wait [#allocation3], 1024  }
  0x1a   :  { %700 = vsyncadd [#allocation3], 4294966272 }
  0x1b   :  { %701 = dma.done.wait [#allocation6], 128  }
  0x1c   :  { %702 = vsyncadd [#allocation6], 4294967168  ;;  %v49_v0 = vld [vmem:[#allocation5] sm:$0xff]  ;;  %vm64_vm0 = vcmask 261120   ;;  %v740_v2 = vld [vmem:[#allocation2 + $0x8] sm:$0xff]  ;;  %v98_v25 = vlaneseq  ;;  %v709_v33 = vmov 0  }
  0x1d   :  { %v598_v1 = vld [vmem:[%s935_s2 + $0x1] ss:$0 sm:$0xff]  ;;  %v597_v4 = vld [vmem:[%s935_s2] ss:$0 sm:$0xff]  ;;  %v745_v5 = vld [vmem:[#allocation2 + $0x10] sm:$0xff]  ;;  %606 = vset.pattern.permute.xlu0 %v709_v33  ;;  %605 = vset.pattern.permute.xlu1 %v709_v33  ;;  %vm236_vm9 = vcmask 1041409  }
  0x1e   :  { %v93_v3 = vmul.f32 %v598_v1, %v49_v0  ;;  %v747_v6 = vld [vmem:[#allocation2] sm:$0xff]  ;;  %v57_v7 = vmul.f32 %v597_v4, %v740_v2  ;;  %v58_v8 = vmul.f32 %v597_v4, %v745_v5  ;;  %v752_v10 = vld [vmem:[#allocation2 + $0x18] sm:$0xff]  ;;  %v762_v18 = vld [vmem:[#allocation2 + $0x28] sm:$0xff]  ;;  %v99_v29 = vshrl.u32 %v98_v25, 7  ;;  %s710_s1 = smov [#allocation7]  }
  0x1f   :  { %v56_v9 = vmul.f32 %v597_v4, %v747_v6  ;;  %v755_v12 = vld [vmem:[#allocation2 + $0x20] sm:$0xff]  ;;  %v59_v15 = vmul.f32 %v597_v4, %v752_v10  ;;  %v764_v19 = vld [vmem:[#allocation2 + $0x30] sm:$0xff]  ;;  %v61_v21 = vmul.f32 %v597_v4, %v762_v18  ;;  %v770_v24 = vld [vmem:[#allocation2 + $0x38] sm:$0xff]  ;;  %v203_v30 = vand.u32 127, %v98_v25  ;;  %s587_s2 = sshll.u32 %s710_s1, 4  ;;  %s588_s2 = int_to_ptr.vmem [resolvable:$true] %s587_s2 }
  0x20   :  { %v94_v11 = vsel %vm64_vm0, %v93_v3, 0.0  ;;  %v68_v13 = vsel %vm64_vm0, %v57_v7, 0.0  ;;  %v71_v16 = vsel %vm64_vm0, %v58_v8, 0.0  ;;  %v60_v17 = vmul.f32 %v597_v4, %v755_v12  ;;  %s679_s27 = scalar_lea.vmem %s588_s2, 128  ;;  %p684_p11 = scmp.lt.s32.totalorder %s588_s2, %s588_s2 }
  0x21   :  { %95 = vadd.xlane.f32.xlu0 %v94_v11  ;;  %69 = vadd.xlane.f32.xlu1 %v68_v13  ;;  %v65_v14 = vsel %vm64_vm0, %v56_v9, 0.0  ;;  %v74_v20 = vsel %vm64_vm0, %v59_v15, 0.0  ;;  %v62_v23 = vmul.f32 %v597_v4, %v764_v19  ;;  %v80_v26 = vsel %vm64_vm0, %v61_v21, 0.0  ;;  %p680_p10 = scmp.ne.s32.totalorder %s588_s2, %s679_s27  ;;  %p685_p12 = scmp.lt.s32.totalorder %s679_s27, %s679_s27 }
  0x22   :  { %v77_v22 = vsel %vm64_vm0, %v60_v17, 0.0  ;;  %v63_v27 = vmul.f32 %v597_v4, %v770_v24  ;;  %v775_v31 = vsub.s32 %v203_v30, %v99_v29  ;;  %v778_v34 = vsub.s32 1, %v99_v29 }
  0x23   :  { %v83_v28 = vsel %vm64_vm0, %v62_v23, 0.0  ;;  %v780_v35 = vsub.s32 0, %v99_v29  ;;  %v782_v37 = vsub.s32 2, %v99_v29  ;;  %v786_v42 = vsub.s32 3, %v99_v29  ;;  %p686_p13 = por %p685_p12, %p684_p11 }
  0x24   :  { %v86_v32 = vsel %vm64_vm0, %v63_v27, 0.0  ;;  %v789_v49 = vsub.s32 4, %v99_v29  ;;  %v799_v59 = vsub.s32 5, %v99_v29  ;;  %v804_v0 = vsub.s32 6, %v99_v29 }
  0x25   :  { %66 = vadd.xlane.f32.xlu0 %v65_v14  ;;  %72 = vadd.xlane.f32.xlu1 %v71_v16  ;;  %v811_v11 = vsub.s32 7, %v99_v29  ;;  %vm238_vm10 = vcmask 1042434   ;;  %vm240_vm11 = vcmask 1043459   ;;  %vm242_vm12 = vcmask 1044484   ;;  %p687_p0 = pnand %p686_p13, %p680_p10 }
  0x26   :  { %vm244_vm13 = vcmask 1045509   ;;  %vm246_vm14 = vcmask 1046534   ;;  %vm248_vm15 = vcmask 1047559  }
  0x29   :  { %75 = vadd.xlane.f32.xlu0 %v74_v20  ;;  %78 = vadd.xlane.f32.xlu1 %v77_v22 }
  0x2d   :  { %81 = vadd.xlane.f32.xlu0 %v80_v26  ;;  %84 = vadd.xlane.f32.xlu1 %v83_v28 }
  0x31   :  { %87 = vadd.xlane.f32.xlu0 %v86_v32 }
  0xaa   :  { %v96_v36 = vpop.xlane.xlu0 %95  ;;  %v70_v39 = vpop.xlane.xlu1 %69 }
  0xab   :  { %v105_v38 = vrot.slane %v96_v36, %v778_v34  ;;  %v101_v41 = vrot.slane %v96_v36, %v780_v35  ;;  %v109_v43 = vrot.slane %v96_v36, %v782_v37  ;;  %v113_v52 = vrot.slane %v96_v36, %v786_v42 }
  0xac   :  { %v117_v58 = vrot.slane %v96_v36, %v789_v49  ;;  %v121_v1 = vrot.slane %v96_v36, %v799_v59  ;;  %v125_v9 = vrot.slane %v96_v36, %v804_v0  ;;  %v129_v17 = vrot.slane %v96_v36, %v811_v11 }
  0xad   :  { %v139_v40 = vadd.f32 %v105_v38, %v70_v39 }
  0xae   :  { %v67_v44 = vpop.xlane.xlu0 %66  ;;  %v73_v46 = vpop.xlane.xlu1 %72 }
  0xaf   :  { %v155_v45 = vmul.f32 0.2, %v139_v40  ;;  %v138_v47 = vadd.f32 %v101_v41, %v67_v44  ;;  %vm147_vm1 = vcmp.gt.f32.partialorder %v139_v40, 0.0  ;;  %v140_v48 = vadd.f32 %v109_v43, %v73_v46 }
  0xb1   :  { %v154_v50 = vmul.f32 0.2, %v138_v47  ;;  %v791_v51 = vsel %vm147_vm1, %v139_v40, %v155_v45  ;;  %vm146_vm2 = vcmp.gt.f32.partialorder %v138_v47, 0.0  ;;  %v156_v54 = vmul.f32 0.2, %v140_v48 }
  0xb2   :  { %182 = vperm.xlu0 %606, %v791_v51   ;;  %v76_v53 = vpop.xlane.xlu0 %75  ;;  %v79_v57 = vpop.xlane.xlu1 %78  ;;  %vm148_vm3 = vcmp.gt.f32.partialorder %v140_v48, 0.0  ;;  %vm251_vm1 = vcmask 64512  }
  0xb3   :  { %v141_v55 = vadd.f32 %v113_v52, %v76_v53  ;;  %v795_v56 = vsel %vm146_vm2, %v138_v47, %v154_v50  ;;  %v142_v60 = vadd.f32 %v117_v58, %v79_v57  ;;  %v801_v62 = vsel %vm148_vm3, %v140_v48, %v156_v54 }
  0xb4   :  { %179 = vperm.xlu1 %605, %v795_v56  }
  0xb5   :  { %v157_v61 = vmul.f32 0.2, %v141_v55  ;;  %vm149_vm4 = vcmp.gt.f32.partialorder %v141_v55, 0.0  ;;  %v158_v3 = vmul.f32 0.2, %v142_v60  ;;  %vm150_vm5 = vcmp.gt.f32.partialorder %v142_v60, 0.0 }
  0xb6   :  { %v82_v63 = vpop.xlane.xlu0 %81  ;;  %v85_v8 = vpop.xlane.xlu1 %84 }
  0xb7   :  { %v143_v4 = vadd.f32 %v121_v1, %v82_v63  ;;  %v807_v7 = vsel %vm149_vm4, %v141_v55, %v157_v61  ;;  %v144_v13 = vadd.f32 %v125_v9, %v85_v8  ;;  %v813_v15 = vsel %vm150_vm5, %v142_v60, %v158_v3 }
  0xb8   :  { %185 = vperm.xlu1 %605, %v801_v62  }
  0xb9   :  { %v159_v14 = vmul.f32 0.2, %v143_v4  ;;  %vm151_vm6 = vcmp.gt.f32.partialorder %v143_v4, 0.0  ;;  %v160_v20 = vmul.f32 0.2, %v144_v13  ;;  %vm152_vm7 = vcmp.gt.f32.partialorder %v144_v13, 0.0 }
  0xba   :  { %v88_v16 = vpop.xlane.xlu0 %87 }
  0xbb   :  { %v145_v21 = vadd.f32 %v129_v17, %v88_v16  ;;  %v167_v22 = vsel %vm151_vm6, %v143_v4, %v159_v14  ;;  %v817_v25 = vsel %vm152_vm7, %v144_v13, %v160_v20 }
  0xbc   :  { %188 = vperm.xlu1 %605, %v807_v7  }
  0xbd   :  { %v161_v23 = vmul.f32 0.2, %v145_v21  ;;  %vm153_vm8 = vcmp.gt.f32.partialorder %v145_v21, 0.0 }
  0xbf   :  { %v820_v26 = vsel %vm153_vm8, %v145_v21, %v161_v23 }
  0xc0   :  { %191 = vperm.xlu1 %605, %v813_v15  }
  0xc4   :  { %194 = vperm.xlu1 %605, %v167_v22  }
  0xc8   :  { %197 = vperm.xlu1 %605, %v817_v25  }
  0xcc   :  { %200 = vperm.xlu1 %605, %v820_v26  }
 0x12d   :  { %v183_v32 = vpop.permute.xlu0 %182 }
 0x12e   :  { %v211_v39 = vrot.slane %v183_v32, %v775_v31 }
 0x12f   :  { %v180_v27 = vpop.permute.xlu1 %179 }
 0x130   :  { %v207_v36 = vrot.slane %v180_v27, %v775_v31 }
 0x132   :  { %v237_v44 = vsel %vm236_vm9, %v211_v39, %v207_v36 }
 0x133   :  { %v186_v28 = vpop.permute.xlu1 %185 }
 0x134   :  { %v215_v38 = vrot.slane %v186_v28, %v775_v31 }
 0x136   :  { %v239_v46 = vsel %vm238_vm10, %v215_v38, %v237_v44 }
 0x137   :  { %v189_v29 = vpop.permute.xlu1 %188 }
 0x138   :  { %v219_v40 = vrot.slane %v189_v29, %v775_v31 }
 0x13a   :  { %v241_v48 = vsel %vm240_vm11, %v219_v40, %v239_v46 }
 0x13b   :  { %v192_v30 = vpop.permute.xlu1 %191 }
 0x13c   :  { %v223_v41 = vrot.slane %v192_v30, %v775_v31 }
 0x13e   :  { %v243_v50 = vsel %vm242_vm12, %v223_v41, %v241_v48 }
 0x13f   :  { %v195_v33 = vpop.permute.xlu1 %194 }
 0x140   :  { %v227_v45 = vrot.slane %v195_v33, %v775_v31 }
 0x142   :  { %v245_v53 = vsel %vm244_vm13, %v227_v45, %v243_v50 }
 0x143   :  { %v198_v43 = vpop.permute.xlu1 %197 }
 0x144   :  { %v231_v47 = vrot.slane %v198_v43, %v775_v31 }
 0x146   :  { %v247_v55 = vsel %vm246_vm14, %v231_v47, %v245_v53 }
 0x147   :  { %v201_v52 = vpop.permute.xlu1 %200 }
 0x148   :  { %v235_v54 = vrot.slane %v201_v52, %v775_v31 }
 0x14a   :  { %v249_v57 = vsel %vm248_vm15, %v235_v54, %v247_v55 }
 0x14b   :  { %v252_v58 = vsel %vm251_vm1, %v249_v57, -inf }
 0x14c   :  { %253 = vmax.xlane.f32.xlu1 %v252_v58 }
 0x1d5   :  { %v254_v60 = vpop.xlane.xlu1 %253 }
 0x1d6   :  { %v259_v61 = vrot.slane %v254_v60, %v780_v35  ;;  %v263_v63 = vrot.slane %v254_v60, %v778_v34  ;;  %v267_v1 = vrot.slane %v254_v60, %v782_v37  ;;  %v271_v9 = vrot.slane %v254_v60, %v786_v42 }
 0x1d7   :  { %v275_v16 = vrot.slane %v254_v60, %v789_v49  ;;  %v279_v21 = vrot.slane %v254_v60, %v799_v59  ;;  %v287_v29 = vrot.slane %v254_v60, %v811_v11 }
 0x1d8   :  { %v296_v3 = vsub.f32 %v795_v56, %v259_v61  ;;  %v297_v4 = vsub.f32 %v791_v51, %v263_v63  ;;  %v298_v13 = vsub.f32 %v801_v62, %v267_v1  ;;  %v299_v17 = vsub.f32 %v807_v7, %v271_v9 }
 0x1d9   :  { %v300_v23 = vsub.f32 %v813_v15, %v275_v16  ;;  %v283_v51 = vrot.slane %v254_v60, %v804_v0  ;;  %v301_v27 = vsub.f32 %v167_v22, %v279_v21  ;;  %v303_v15 = vsub.f32 %v820_v26, %v287_v29 }
 0x1da   :  { %v304_v8 = vmul.f32 1.442695, %v296_v3  ;;  %v306_v14 = vmul.f32 1.442695, %v297_v4  ;;  %v308_v20 = vmul.f32 1.442695, %v298_v13 }
 0x1db   :  { %v310_v56 = vmul.f32 1.442695, %v299_v17  ;;  %v312_v28 = vmul.f32 1.442695, %v300_v23  ;;  %v302_v7 = vsub.f32 %v817_v25, %v283_v51  ;;  %v314_v30 = vmul.f32 1.442695, %v301_v27 }
 0x1dc   :  { %607 = vpow2.f32 %v304_v8  ;;  %v318_v36 = vmul.f32 1.442695, %v303_v15 }
 0x1dd   :  { %609 = vpow2.f32 %v306_v14  ;;  %v316_v22 = vmul.f32 1.442695, %v302_v7 }
 0x1de   :  { %611 = vpow2.f32 %v308_v20 }
 0x1df   :  { %613 = vpow2.f32 %v310_v56 }
 0x1e0   :  { %615 = vpow2.f32 %v312_v28 }
 0x1e1   :  { %617 = vpow2.f32 %v314_v30 }
 0x1e2   :  { %619 = vpow2.f32 %v316_v22 }
 0x1e3   :  { %621 = vpow2.f32 %v318_v36 }
 0x1e9   :  { %v851_v62 = vpop.eup %607 }
 0x1ea   :  { %329 = vperm.xlu0 %606, %v851_v62   ;;  %v856_v32 = vpop.eup %609 }
 0x1eb   :  { %v860_v33 = vpop.eup %611 }
 0x1ec   :  { %v863_v38 = vpop.eup %613 }
 0x1ed   :  { %v866_v25 = vpop.eup %615 }
 0x1ee   :  { %332 = vperm.xlu0 %606, %v856_v32   ;;  %v869_v39 = vpop.eup %617 }
 0x1ef   :  { %v620_v26 = vpop.eup %619 }
 0x1f0   :  { %v872_v40 = vpop.eup %621 }
 0x1f2   :  { %335 = vperm.xlu0 %606, %v860_v33  }
 0x1f6   :  { %338 = vperm.xlu0 %606, %v863_v38  }
 0x1fa   :  { %341 = vperm.xlu0 %606, %v866_v25  }
 0x1fe   :  { %344 = vperm.xlu0 %606, %v869_v39  }
 0x202   :  { %347 = vperm.xlu0 %606, %v620_v26  }
 0x206   :  { %350 = vperm.xlu0 %606, %v872_v40  }
 0x265   :  { %v330_v41 = vpop.permute.xlu0 %329 }
 0x266   :  { %v355_v52 = vrot.slane %v330_v41, %v775_v31 }
 0x269   :  { %v333_v43 = vpop.permute.xlu0 %332 }
 0x26a   :  { %v359_v48 = vrot.slane %v333_v43, %v775_v31 }
 0x26c   :  { %v384_v57 = vsel %vm236_vm9, %v359_v48, %v355_v52 }
 0x26d   :  { %v336_v44 = vpop.permute.xlu0 %335 }
 0x26e   :  { %v363_v50 = vrot.slane %v336_v44, %v775_v31 }
 0x270   :  { %v385_v60 = vsel %vm238_vm10, %v363_v50, %v384_v57 }
 0x271   :  { %v339_v45 = vpop.permute.xlu0 %338 }
 0x272   :  { %v367_v53 = vrot.slane %v339_v45, %v775_v31 }
 0x274   :  { %v386_v63 = vsel %vm240_vm11, %v367_v53, %v385_v60 }
 0x275   :  { %v342_v46 = vpop.permute.xlu0 %341 }
 0x276   :  { %v371_v54 = vrot.slane %v342_v46, %v775_v31 }
 0x278   :  { %v387_v1 = vsel %vm242_vm12, %v371_v54, %v386_v63 }
 0x279   :  { %v345_v47 = vpop.permute.xlu0 %344 }
 0x27a   :  { %v375_v58 = vrot.slane %v345_v47, %v775_v31 }
 0x27c   :  { %v388_v4 = vsel %vm244_vm13, %v375_v58, %v387_v1 }
 0x27d   :  { %v348_v55 = vpop.permute.xlu0 %347 }
 0x27e   :  { %v379_v61 = vrot.slane %v348_v55, %v775_v31 }
 0x280   :  { %v389_v9 = vsel %vm246_vm14, %v379_v61, %v388_v4 }
 0x281   :  { %v351_v3 = vpop.permute.xlu0 %350 }
 0x282   :  { %v383_v8 = vrot.slane %v351_v3, %v775_v31 }
 0x284   :  { %v390_v13 = vsel %vm248_vm15, %v383_v8, %v389_v9 }
 0x285   :  { %v392_v14 = vsel %vm251_vm1, %v390_v13, 0.0 }
 0x286   :  { %393 = vadd.xlane.f32.xlu1 %v392_v14 }
 0x30f   :  { %v394_v16 = vpop.xlane.xlu1 %393 }
 0x310   :  { %v403_v17 = vrot.slane %v394_v16, %v778_v34  ;;  %v399_v20 = vrot.slane %v394_v16, %v780_v35  ;;  %v423_v21 = vrot.slane %v394_v16, %v804_v0  ;;  %v407_v23 = vrot.slane %v394_v16, %v782_v37 }
 0x311   :  { %v411_v31 = vrot.slane %v394_v16, %v786_v42  ;;  %v415_v56 = vrot.slane %v394_v16, %v789_v49  ;;  %v419_v51 = vrot.slane %v394_v16, %v799_v59  ;;  %v427_v34 = vrot.slane %v394_v16, %v811_v11 }
 0x312   :  { %623 = vrcp.f32 %v403_v17 }
 0x313   :  { %625 = vrcp.f32 %v399_v20 }
 0x314   :  { %627 = vrcp.f32 %v423_v21 }
 0x315   :  { %629 = vrcp.f32 %v407_v23 }
 0x316   :  { %631 = vrcp.f32 %v411_v31 }
 0x317   :  { %633 = vrcp.f32 %v415_v56 }
 0x318   :  { %635 = vrcp.f32 %v419_v51 }
 0x319   :  { %637 = vrcp.f32 %v427_v34 }
 0x31f   :  { %v624_v27 = vpop.eup %623 }
 0x320   :  { %v626_v35 = vpop.eup %625  ;;  %v439_v0 = vmul.f32 %v624_v27, %v856_v32 }
 0x321   :  { %v628_v37 = vpop.eup %627  ;;  %v437_v28 = vmul.f32 %v626_v35, %v851_v62 }
 0x322   :  { %v630_v29 = vpop.eup %629  ;;  %v453_v42 = vmul.f32 8.0, %v439_v0  ;;  %v449_v7 = vmul.f32 %v628_v37, %v620_v26 }
 0x323   :  { %v452_v30 = vmul.f32 8.0, %v437_v28  ;;  %v441_v15 = vmul.f32 %v630_v29, %v860_v33  ;;  %v632_v49 = vpop.eup %631 }
 0x324   :  { %467 = vperm.xlu1 %605, %v453_v42   ;;  %v458_v59 = vmul.f32 8.0, %v449_v7  ;;  %v443_v11 = vmul.f32 %v632_v49, %v863_v38  ;;  %v634_v36 = vpop.eup %633 }
 0x325   :  { %462 = vperm.xlu0 %606, %v452_v30   ;;  %v454_v22 = vmul.f32 8.0, %v441_v15  ;;  %v445_v62 = vmul.f32 %v634_v36, %v866_v25  ;;  %v636_v41 = vpop.eup %635 }
 0x326   :  { %v455_v32 = vmul.f32 8.0, %v443_v11  ;;  %v447_v43 = vmul.f32 %v636_v41, %v869_v39  ;;  %v638_v33 = vpop.eup %637 }
 0x327   :  { %v456_v26 = vmul.f32 8.0, %v445_v62  ;;  %v451_v45 = vmul.f32 %v638_v33, %v872_v40 }
 0x328   :  { %492 = vperm.xlu1 %605, %v458_v59   ;;  %v457_v44 = vmul.f32 8.0, %v447_v43 }
 0x329   :  { %472 = vperm.xlu0 %606, %v454_v22   ;;  %v459_v46 = vmul.f32 8.0, %v451_v45 }
 0x32d   :  { %477 = vperm.xlu0 %606, %v455_v32  }
 0x331   :  { %482 = vperm.xlu0 %606, %v456_v26  }
 0x335   :  { %487 = vperm.xlu0 %606, %v457_v44  }
 0x339   :  { %497 = vperm.xlu0 %606, %v459_v46  }
 0x39f   :  { %v468_v38 = vpop.permute.xlu1 %467 }
 0x3a0   :  { %v501_v47 = vmul.f32 %v468_v38, %v740_v2  ;;  %v463_v48 = vpop.permute.xlu0 %462 }
 0x3a1   :  { %v500_v50 = vmul.f32 %v463_v48, %v747_v6 }
 0x3a2   :  { %v515_v25 = vsel %vm64_vm0, %v501_v47, 0.0 }
 0x3a3   :  { %v516_v52 = vrot.slane %v515_v25, 4  ;;  %v508_v53 = vsel %vm64_vm0, %v500_v50, 0.0  ;;  %v493_v39 = vpop.permute.xlu1 %492 }
 0x3a4   :  { %v509_v54 = vrot.slane %v508_v53, 4  ;;  %v473_v55 = vpop.permute.xlu0 %472  ;;  %v506_v40 = vmul.f32 %v493_v39, %v764_v19 }
 0x3a5   :  { %v502_v57 = vmul.f32 %v473_v55, %v745_v5  ;;  %v517_v58 = vadd.f32 %v516_v52, %v515_v25 }
 0x3a6   :  { %v510_v61 = vadd.f32 %v509_v54, %v508_v53  ;;  %v550_v1 = vsel %vm64_vm0, %v506_v40, 0.0 }
 0x3a7   :  { %v522_v60 = vsel %vm64_vm0, %v502_v57, 0.0  ;;  %v518_v4 = vrot.slane %v517_v58, 2  ;;  %v551_v5 = vrot.slane %v550_v1, 4 }
 0x3a8   :  { %v523_v2 = vrot.slane %v522_v60, 4  ;;  %v478_v63 = vpop.permute.xlu0 %477  ;;  %v511_v9 = vrot.slane %v510_v61, 2 }
 0x3a9   :  { %v503_v6 = vmul.f32 %v478_v63, %v752_v10  ;;  %v519_v20 = vadd.f32 %v518_v4, %v517_v58  ;;  %v552_v51 = vadd.f32 %v551_v5, %v550_v1 }
 0x3aa   :  { %v524_v3 = vadd.f32 %v523_v2, %v522_v60  ;;  %v512_v23 = vadd.f32 %v511_v9, %v510_v61 }
 0x3ab   :  { %v529_v8 = vsel %vm64_vm0, %v503_v6, 0.0  ;;  %v520_v37 = vrot.slane %v519_v20, 1  ;;  %v553_v30 = vrot.slane %v552_v51, 2 }
 0x3ac   :  { %v530_v13 = vrot.slane %v529_v8, 4  ;;  %v483_v14 = vpop.permute.xlu0 %482  ;;  %v525_v16 = vrot.slane %v524_v3, 2  ;;  %v513_v29 = vrot.slane %v512_v23, 1 }
 0x3ad   :  { %v504_v19 = vmul.f32 %v483_v14, %v755_v12  ;;  %v521_v36 = vadd.f32 %v520_v37, %v519_v20  ;;  %v554_v43 = vadd.f32 %v553_v30, %v552_v51 }
 0x3ae   :  { %v531_v17 = vadd.f32 %v530_v13, %v529_v8  ;;  %v526_v27 = vadd.f32 %v525_v16, %v524_v3 }
 0x3af   :  { %v536_v21 = vsel %vm64_vm0, %v504_v19, 0.0  ;;  %v555_v50 = vrot.slane %v554_v43, 1 }
 0x3b0   :  { %v532_v31 = vrot.slane %v531_v17, 2  ;;  %v537_v10 = vrot.slane %v536_v21, 4  ;;  %v488_v56 = vpop.permute.xlu0 %487  ;;  %v527_v15 = vrot.slane %v526_v27, 1 }
 0x3b1   :  { %v505_v34 = vmul.f32 %v488_v56, %v762_v18  ;;  %v514_v18 = vadd.f32 %v513_v29, %v512_v23  ;;  %v556_v40 = vadd.f32 %v555_v50, %v554_v43 }
 0x3b2   :  { %v533_v35 = vadd.f32 %v532_v31, %v531_v17  ;;  %v538_v0 = vadd.f32 %v537_v10, %v536_v21  ;;  %v528_v33 = vadd.f32 %v527_v15, %v526_v27 }
 0x3b3   :  { %v543_v28 = vsel %vm64_vm0, %v505_v34, 0.0  ;;  %v572_v47 = vsel %vm236_vm9, %v521_v36, %v514_v18 }
 0x3b4   :  { %v539_v42 = vrot.slane %v538_v0, 2  ;;  %v544_v12 = vrot.slane %v543_v28, 4  ;;  %v498_v7 = vpop.permute.xlu0 %497  ;;  %v534_v59 = vrot.slane %v533_v35, 1  ;;  %v573_v25 = vsel %vm238_vm10, %v528_v33, %v572_v47 }
 0x3b5   :  { %v507_v49 = vmul.f32 %v498_v7, %v770_v24 }
 0x3b6   :  { %v540_v22 = vadd.f32 %v539_v42, %v538_v0  ;;  %v545_v11 = vadd.f32 %v544_v12, %v543_v28  ;;  %v535_v44 = vadd.f32 %v534_v59, %v533_v35 }
 0x3b7   :  { %v557_v32 = vsel %vm64_vm0, %v507_v49, 0.0 }
 0x3b8   :  { %v541_v62 = vrot.slane %v540_v22, 1  ;;  %v546_v41 = vrot.slane %v545_v11, 2  ;;  %v558_v26 = vrot.slane %v557_v32, 4  ;;  %v574_v52 = vsel %vm240_vm11, %v535_v44, %v573_v25 }
 0x3ba   :  { %v547_v45 = vadd.f32 %v546_v41, %v545_v11  ;;  %v559_v46 = vadd.f32 %v558_v26, %v557_v32  ;;  %v542_v38 = vadd.f32 %v541_v62, %v540_v22 }
 0x3bc   :  { %v548_v48 = vrot.slane %v547_v45, 1  ;;  %v560_v24 = vrot.slane %v559_v46, 2  ;;  %v575_v54 = vsel %vm242_vm12, %v542_v38, %v574_v52 }
 0x3be   :  { %v549_v53 = vadd.f32 %v548_v48, %v547_v45  ;;  %v561_v39 = vadd.f32 %v560_v24, %v559_v46 }
 0x3c0   :  { %v562_v55 = vrot.slane %v561_v39, 1  ;;  %v576_v57 = vsel %vm244_vm13, %v549_v53, %v575_v54 }
 0x3c1   :  { %v577_v60 = vsel %vm246_vm14, %v556_v40, %v576_v57 }
 0x3c2   :  { %v563_v58 = vadd.f32 %v562_v55, %v561_v39 }
 0x3c4   :  { %v578_v61 = vsel %vm248_vm15, %v563_v58, %v577_v60 }
 0x3c5   :  { %580 = vst.msk [vmem:[#allocation7] sm:$0xff] %vm64_vm0, %v578_v61 }
 0x3c6   :  { %690 = shalt.err (!%p687_p0)
}
 0x3c7   :  { %590 = dma.vmem_to_hbm [thread:$0]  %s588_s2, 128, %s936_s3, [#allocation4]  }
 0x3c8   :  { %703 = dma.done.wait [#allocation4], 128  }
 0x3c9   :  { %704 = vsyncadd [#allocation4], 4294967168 }
 0x3ca   :  { %594 = vsyncpa [#allocation3], 1 }
 0x3cb   :  { %595 = vsyncpa [#allocation6], 1 }
 0x3cc   :  { %596 = vsyncpa [#allocation4], 1 }

</bundles_post_ra>
